<compile_context>
chip_gen: v7x
topology: tpu7x:2x2x1
jax: 0.10.0
libtpu: 0.0.40
codegen_flags: <defaults>
</compile_context>

<pallas_src>
import jax
import jax.numpy as jnp
import numpy as np
from jax.experimental import pallas as pl
from jax.experimental.pallas import tpu as pltpu
from functools import partial


def pinn_mlp_kernel(x_ref, w0_ref, b0_ref, wh_ref, bh_ref, wo_ref, bo_ref,
                    o_ref):
    """Folded MLP; activations are (rows, fold*H) and lane/MXU dense.

    MXU operands are cast to the weights' dtype (bf16 on the fast path) with
    float32 accumulation; bias add and tanh run in float32 on the VPU/EUP.
    """
    mxu_dt = w0_ref.dtype
    # Input layer: Linear(3, H) + Tanh on the folded (rows, fold*3) tile.
    h = jnp.tanh(
        jnp.dot(x_ref[...].astype(mxu_dt), w0_ref[...],
                preferred_element_type=jnp.float32)
        + b0_ref[...])
    # Hidden layers: (n_layers - 3) x [Linear(H, H) + Tanh], statically
    # unrolled (L is small -> full LLO scheduling visibility).
    for l in range(wh_ref.shape[0]):
        h = jnp.tanh(
            jnp.dot(h.astype(mxu_dt), wh_ref[l],
                    preferred_element_type=jnp.float32)
            + bh_ref[l])
    # Output layer: Linear(H, 1) per folded sample group -> (rows, fold).
    o_ref[...] = (
        jnp.dot(h.astype(mxu_dt), wo_ref[...],
                preferred_element_type=jnp.float32)
        + bo_ref[...]).astype(o_ref.dtype)


def _round_up(n, m):
    return ((n + m - 1) // m) * m


def _block_diag(w, fold):
    """(..., k, n) -> (..., fold*k, fold*n) with `w` repeated on the diagonal."""
    if fold == 1:
        return w
    k, n = w.shape[-2:]
    eye = jnp.eye(fold, dtype=w.dtype)
    out = w[..., None, :, None, :] * eye[:, None, :, None]
    return out.reshape(*w.shape[:-2], fold * k, fold * n)


def _tpu_generation_and_cores():
    """Best-effort (generation, tensorcores_per_device) with safe fallbacks."""
    kind = jax.devices()[0].device_kind.lower()   # "tpu v5 lite", "tpu7x", ...
    gen = 0
    for ch in kind:
        if ch.isdigit():
            gen = int(ch)
            break
    # Devices that pair two TensorCores (megacore): v4, v5p, v7x.
    if gen == 4 or gen >= 7:
        n_tc = 2
    elif gen == 5 and ("lite" not in kind and "v5e" not in kind):
        n_tc = 2                                   # v5p
    else:
        n_tc = 1                                   # v5e / v6e / unknown
    return gen, n_tc


def pinn_wave_forward(x, params, *, tile_m=None, fold=None, mxu_dtype=None):
    """Forward pass of PDE_PINN_WAVE.fwd as a Pallas TPU kernel.

    x: (N, 3) float32 rows of (x, y, t).  Returns (N, 1) float32.
    mxu_dtype=None -> bf16 MXU operands (f32 accumulation / bias / tanh);
    pass jnp.float32 for an exact-f32 path.
    """
    w0, b0, wh, bh, wo, bo = params
    N, in_dim = x.shape
    H = w0.shape[1]
    L = wh.shape[0]
    assert L >= 1, "n_layers must be >= 4 (at least one hidden block)"

    gen, num_tc = _tpu_generation_and_cores()

    # MXU operand dtype: bf16 is MXU-native on every supported generation;
    # accumulation / bias / tanh stay in f32, so accuracy loss is small.
    if mxu_dtype is None:
        mxu_dtype = jnp.bfloat16

    # Lane/MXU fold: pack `fold` consecutive samples into the lane axis so
    # activations are (rows, fold*H).  v6e/v7x have a 256-wide bf16 MXU tile;
    # older chips are 128-wide.
    mxu_width = 256 if (mxu_dtype == jnp.bfloat16 and gen >= 6) else 128
    if fold is None:
        fold = mxu_width // H if (0 < H <= mxu_width and mxu_width % H == 0) else 1

    min_sub = 8                       # f32 activation sublane granularity
    row_quant = fold * min_sub        # sample granularity of one folded row

    if tile_m is None:
        # Biggest tile first: fewer grid steps -> less per-step pipeline
        # overhead; VMEM at tile_m=16384 is only a few MiB.
        tile_m = min(_round_up(N, row_quant), 16384)
        # 2-TC chips: split the batch across cores only while each step keeps
        # >= 2048 samples of work (at small N the extra steps cost more than
        # the second core saves).
        if num_tc > 1:
            while ((_round_up(N, tile_m) // tile_m) < num_tc
                   and tile_m >= 2 * 2048
                   and (tile_m // 2) % row_quant == 0):
                tile_m //= 2
    assert tile_m % row_quant == 0, (
        f"tile_m={tile_m} must be a multiple of fold*8={row_quant}")

    N_pad = _round_up(N, tile_m)
    grid = (N_pad // tile_m,)
    M4 = tile_m // fold               # folded rows per tile
    Hf = fold * H
    Kf = fold * in_dim

    # Zero-pad the batch so the grid divides it evenly; padding is sliced off
    # at the end (fixes arbitrary-N handling).
    x_p = x if N_pad == N else jnp.pad(x, ((0, N_pad - N), (0, 0)))
    xf = x_p.reshape(N_pad // fold, Kf)                        # f32 in HBM

    # Lane-dense folding of weights (tiny one-time host-side math).  Weights
    # are stored in the MXU dtype; biases stay f32 (added to f32 accumulators).
    w0f = _block_diag(w0, fold).astype(mxu_dtype)              # (Kf, Hf)
    b0f = jnp.tile(b0, (1, fold)).astype(jnp.float32)          # (1, Hf)
    whf = _block_diag(wh, fold).astype(mxu_dtype)              # (L, Hf, Hf)
    bhf = jnp.tile(bh, (1, 1, fold)).astype(jnp.float32)       # (L, 1, Hf)
    wof = _block_diag(wo, fold).astype(mxu_dtype)              # (Hf, fold)
    bof = jnp.tile(bo, (1, fold)).astype(jnp.float32)          # (1, fold)

    # Grid-invariant weight specs (constant block index -> no re-DMA across
    # grid steps; the duplicate pipeline buffer is negligible at these sizes).
    def wspec(shape):
        return pl.BlockSpec(shape, lambda i: (0,) * len(shape))

    # VMEM budget from the actual footprint, capped at 48 MiB to leave
    # compiler-scratch headroom on v7x's 64 MiB physical VMEM.
    w_item = np.dtype(mxu_dtype).itemsize
    weight_bytes = (w0f.size + whf.size + wof.size) * w_item \
        + (b0f.size + bhf.size + bof.size) * 4
    x_tile_bytes = M4 * Kf * 4
    out_tile_bytes = M4 * fold * 4
    act_bytes = 4 * M4 * Hf * 4
    footprint = (2 * weight_bytes + 2 * (x_tile_bytes + out_tile_bytes)
                 + act_bytes)
    vmem_limit = int(min(48 << 20, max(32 << 20, 2 * footprint)))

    out_f = pl.pallas_call(
        pinn_mlp_kernel,
        out_shape=jax.ShapeDtypeStruct((N_pad // fold, fold), jnp.float32),
        grid_spec=pltpu.PrefetchScalarGridSpec(
            num_scalar_prefetch=0,
            grid=grid,
            in_specs=[
                pl.BlockSpec((M4, Kf), lambda i: (i, 0)),   # folded x tile
                wspec((Kf, Hf)),                            # W0  (block-diag)
                wspec((1, Hf)),                             # b0  (tiled)
                wspec((L, Hf, Hf)),                         # Wh  (block-diag)
                wspec((L, 1, Hf)),                          # bh  (tiled)
                wspec((Hf, fold)),                          # W_out (block-diag)
                wspec((1, fold)),                           # b_out (tiled)
            ],
            out_specs=pl.BlockSpec((M4, fold), lambda i: (i, 0)),
        ),
        compiler_params=pltpu.CompilerParams(
            dimension_semantics=("parallel",),
            vmem_limit_bytes=vmem_limit,
        ),
    )(xf, w0f, b0f, whf, bhf, wof, bof)

    # Row-major unfold restores the original sample order: element (r, g) of
    # (N_pad//fold, fold) is sample fold*r + g.
    u = out_f.reshape(N_pad, 1)
    return u if N_pad == N else u[:N]


def init_params(key, n_hidden, n_layers):
    """Deterministic synthetic parameters matching the module's shapes
    (PyTorch nn.Linear default init: U(-1/sqrt(fan_in), 1/sqrt(fan_in)))."""
    L = n_layers - 3  # number of hidden Linear(H,H)+Tanh blocks
    ks = jax.random.split(key, 6)
    scale_in = 1.0 / jnp.sqrt(3.0)
    scale_h = 1.0 / jnp.sqrt(float(n_hidden))
    w0 = jax.random.uniform(ks[0], (3, n_hidden), jnp.float32,
                            -scale_in, scale_in)
    b0 = jax.random.uniform(ks[1], (1, n_hidden), jnp.float32,
                            -scale_in, scale_in)
    wh = jax.random.uniform(ks[2], (L, n_hidden, n_hidden), jnp.float32,
                            -scale_h, scale_h)
    bh = jax.random.uniform(ks[3], (L, 1, n_hidden), jnp.float32,
                            -scale_h, scale_h)
    wo = jax.random.uniform(ks[4], (n_hidden, 1), jnp.float32,
                            -scale_h, scale_h)
    bo = jax.random.uniform(ks[5], (1, 1), jnp.float32, -scale_h, scale_h)
    return (w0, b0, wh, bh, wo, bo)


def reference_forward(x, params):
    """Pure-JAX reference of the same MLP (for correctness checks)."""
    w0, b0, wh, bh, wo, bo = params
    h = jnp.tanh(x @ w0 + b0)
    for l in range(wh.shape[0]):
        h = jnp.tanh(h @ wh[l] + bh[l])
    return h @ wo + bo


if __name__ == "__main__":
    key = jax.random.PRNGKey(0)
    k_x, k_p = jax.random.split(key)

    # Small shapes consistent with the module: n_hidden=32, n_layers=5 ->
    # two hidden Linear(H,H)+Tanh blocks; (x, y, t) points in [0,1]^3.
    N, n_hidden, n_layers = 256, 32, 5
    x = jax.random.uniform(k_x, (N, 3), jnp.float32)
    params = init_params(k_p, n_hidden, n_layers)
    u_ref = reference_forward(x, params)

    # 1) Exact float32 path (matches the f32 Torch module).
    run_f32 = jax.jit(partial(pinn_wave_forward, mxu_dtype=jnp.float32))
    u_f32 = jax.block_until_ready(run_f32(x, params))
    assert u_f32.shape == (N, 1)
    assert jnp.allclose(u_f32, u_ref, atol=1e-5, rtol=1e-5), (
        float(jnp.max(jnp.abs(u_f32 - u_ref))))

    # 2) Device-tuned fast path: bf16 MXU operands (f32 accumulation, f32
    #    bias/tanh), 256-wide fold on v6e/v7x and 128-wide elsewhere.
    run_fast = jax.jit(partial(pinn_wave_forward))
    u_fast = jax.block_until_ready(run_fast(x, params))
    assert u_fast.shape == (N, 1)
    err_fast = float(jnp.max(jnp.abs(u_fast - u_ref)))
    assert err_fast < 5e-2, err_fast

    # 3) Non-aligned batch exercises the zero-pad / slice path.
    N2 = 173
    u2 = jax.block_until_ready(run_fast(x[:N2], params))
    assert u2.shape == (N2, 1)
    err2 = float(jnp.max(jnp.abs(u2 - u_ref[:N2])))
    assert err2 < 5e-2, err2

    # TODO(synk): the optional rff (random Fourier feature) input embedding
    # (set_rff=True) is not implemented; only the Linear(3,H) input path is.
    # TODO(synk): ResidualLoss / torch.autograd PDE derivatives and the
    # Train/Validate loops are training-time machinery, not part of forward().
    print("KERNEL_OK")
</pallas_src>

<mosaic_0001>
module attributes {stable_mosaic.version = 11 : i64} {
  func.func @pinn_mlp_kernel(%arg0: i32, %arg1: memref<64x12xf32, #tpu.memory_space<vmem>>, %arg2: memref<12x128xf32, #tpu.memory_space<vmem>>, %arg3: memref<1x128xf32, #tpu.memory_space<vmem>>, %arg4: memref<2x128x128xf32, #tpu.memory_space<vmem>>, %arg5: memref<2x1x128xf32, #tpu.memory_space<vmem>>, %arg6: memref<128x4xf32, #tpu.memory_space<vmem>>, %arg7: memref<1x4xf32, #tpu.memory_space<vmem>>, %arg8: memref<64x4xf32, #tpu.memory_space<vmem>>) attributes {dimension_semantics = [#tpu.dimension_semantics<parallel>], iteration_bounds = array<i64: 1>, scalar_prefetch = 0 : i64, scratch_operands = 0 : i64, tpu.core_type = #tpu.core_type<tc>, window_params = [{transform_indices = @transform_0, window_bounds = array<i64: 64, 12>}, {pipeline_mode = #tpu.pipeline_mode<synchronous>, transform_indices = @transform_1, window_bounds = array<i64: 12, 128>}, {pipeline_mode = #tpu.pipeline_mode<synchronous>, transform_indices = @transform_2, window_bounds = array<i64: 1, 128>}, {pipeline_mode = #tpu.pipeline_mode<synchronous>, transform_indices = @transform_3, window_bounds = array<i64: 2, 128, 128>}, {pipeline_mode = #tpu.pipeline_mode<synchronous>, transform_indices = @transform_4, window_bounds = array<i64: 2, 1, 128>}, {pipeline_mode = #tpu.pipeline_mode<synchronous>, transform_indices = @transform_5, window_bounds = array<i64: 128, 4>}, {pipeline_mode = #tpu.pipeline_mode<synchronous>, transform_indices = @transform_6, window_bounds = array<i64: 1, 4>}, {transform_indices = @transform_7, window_bounds = array<i64: 64, 4>}]} {
    %c0 = arith.constant 0 : index
    %c0_0 = arith.constant 0 : index
    %0 = vector.load %arg1[%c0, %c0_0] : memref<64x12xf32, #tpu.memory_space<vmem>>, vector<64x12xf32>
    %c0_1 = arith.constant 0 : index
    %c0_2 = arith.constant 0 : index
    %1 = vector.load %arg2[%c0_1, %c0_2] : memref<12x128xf32, #tpu.memory_space<vmem>>, vector<12x128xf32>
    %cst = arith.constant dense<0.000000e+00> : vector<64x128xf32>
    %2 = tpu.matmul %0, %1, %cst {dimension_numbers = #tpu.dot_dimension_numbers<[1], [0], [0], [1], [0, 0, 1, 1], [], []>} : vector<64x12xf32>, vector<12x128xf32>, vector<64x128xf32> -> vector<64x128xf32>
    %c0_3 = arith.constant 0 : index
    %c0_4 = arith.constant 0 : index
    %3 = vector.load %arg3[%c0_3, %c0_4] : memref<1x128xf32, #tpu.memory_space<vmem>>, vector<1x128xf32>
    %4 = vector.broadcast %3 : vector<1x128xf32> to vector<64x128xf32>
    %5 = arith.addf %2, %4 : vector<64x128xf32>
    %6 = math.tanh %5 : vector<64x128xf32>
    %c0_5 = arith.constant 0 : index
    %c0_6 = arith.constant 0 : index
    %c0_7 = arith.constant 0 : index
    %7 = vector.load %arg4[%c0_5, %c0_6, %c0_7] : memref<2x128x128xf32, #tpu.memory_space<vmem>>, vector<1x128x128xf32>
    %8 = vector.shape_cast %7 : vector<1x128x128xf32> to vector<128x128xf32>
    %cst_8 = arith.constant dense<0.000000e+00> : vector<64x128xf32>
    %9 = tpu.matmul %6, %8, %cst_8 {dimension_numbers = #tpu.dot_dimension_numbers<[1], [0], [0], [1], [0, 0, 1, 1], [], []>} : vector<64x128xf32>, vector<128x128xf32>, vector<64x128xf32> -> vector<64x128xf32>
    %c0_9 = arith.constant 0 : index
    %c0_10 = arith.constant 0 : index
    %c0_11 = arith.constant 0 : index
    %10 = vector.load %arg5[%c0_9, %c0_10, %c0_11] : memref<2x1x128xf32, #tpu.memory_space<vmem>>, vector<1x1x128xf32>
    %11 = vector.shape_cast %10 : vector<1x1x128xf32> to vector<1x128xf32>
    %12 = vector.broadcast %11 : vector<1x128xf32> to vector<64x128xf32>
    %13 = arith.addf %9, %12 : vector<64x128xf32>
    %14 = math.tanh %13 : vector<64x128xf32>
    %c1 = arith.constant 1 : index
    %c0_12 = arith.constant 0 : index
    %c0_13 = arith.constant 0 : index
    %15 = vector.load %arg4[%c1, %c0_12, %c0_13] : memref<2x128x128xf32, #tpu.memory_space<vmem>>, vector<1x128x128xf32>
    %16 = vector.shape_cast %15 : vector<1x128x128xf32> to vector<128x128xf32>
    %cst_14 = arith.constant dense<0.000000e+00> : vector<64x128xf32>
    %17 = tpu.matmul %14, %16, %cst_14 {dimension_numbers = #tpu.dot_dimension_numbers<[1], [0], [0], [1], [0, 0, 1, 1], [], []>} : vector<64x128xf32>, vector<128x128xf32>, vector<64x128xf32> -> vector<64x128xf32>
    %c1_15 = arith.constant 1 : index
    %c0_16 = arith.constant 0 : index
    %c0_17 = arith.constant 0 : index
    %18 = vector.load %arg5[%c1_15, %c0_16, %c0_17] : memref<2x1x128xf32, #tpu.memory_space<vmem>>, vector<1x1x128xf32>
    %19 = vector.shape_cast %18 : vector<1x1x128xf32> to vector<1x128xf32>
    %20 = vector.broadcast %19 : vector<1x128xf32> to vector<64x128xf32>
    %21 = arith.addf %17, %20 : vector<64x128xf32>
    %22 = math.tanh %21 : vector<64x128xf32>
    %c0_18 = arith.constant 0 : index
    %c0_19 = arith.constant 0 : index
    %23 = vector.load %arg6[%c0_18, %c0_19] : memref<128x4xf32, #tpu.memory_space<vmem>>, vector<128x4xf32>
    %cst_20 = arith.constant dense<0.000000e+00> : vector<64x4xf32>
    %24 = tpu.matmul %22, %23, %cst_20 {dimension_numbers = #tpu.dot_dimension_numbers<[1], [0], [0], [1], [0, 0, 1, 1], [], []>} : vector<64x128xf32>, vector<128x4xf32>, vector<64x4xf32> -> vector<64x4xf32>
    %c0_21 = arith.constant 0 : index
    %c0_22 = arith.constant 0 : index
    %25 = vector.load %arg7[%c0_21, %c0_22] : memref<1x4xf32, #tpu.memory_space<vmem>>, vector<1x4xf32>
    %26 = vector.broadcast %25 : vector<1x4xf32> to vector<64x4xf32>
    %27 = arith.addf %24, %26 : vector<64x4xf32>
    %c0_23 = arith.constant 0 : index
    %c0_24 = arith.constant 0 : index
    %28 = vector.load %arg8[%c0_23, %c0_24] : memref<64x4xf32, #tpu.memory_space<vmem>>, vector<64x4xf32>
    tpu.vector_store %arg8[%c0_23, %c0_24], %27 {strides = array<i32>} : memref<64x4xf32, #tpu.memory_space<vmem>>, vector<64x4xf32>,
    return
  }
  func.func @transform_0(%arg0: i32) -> (i32, i32) {
    %c0_i32 = arith.constant 0 : i32
    %c0_i32_0 = arith.constant 0 : i32
    return %arg0, %c0_i32 : i32, i32
  }
  func.func @transform_1(%arg0: i32) -> (i32, i32) {
    %c0_i32 = arith.constant 0 : i32
    %c0_i32_0 = arith.constant 0 : i32
    %c0_i32_1 = arith.constant 0 : i32
    return %c0_i32, %c0_i32_0 : i32, i32
  }
  func.func @transform_2(%arg0: i32) -> (i32, i32) {
    %c0_i32 = arith.constant 0 : i32
    %c0_i32_0 = arith.constant 0 : i32
    %c0_i32_1 = arith.constant 0 : i32
    return %c0_i32, %c0_i32_0 : i32, i32
  }
  func.func @transform_3(%arg0: i32) -> (i32, i32, i32) {
    %c0_i32 = arith.constant 0 : i32
    %c0_i32_0 = arith.constant 0 : i32
    %c0_i32_1 = arith.constant 0 : i32
    %c0_i32_2 = arith.constant 0 : i32
    return %c0_i32, %c0_i32_0, %c0_i32_1 : i32, i32, i32
  }
  func.func @transform_4(%arg0: i32) -> (i32, i32, i32) {
    %c0_i32 = arith.constant 0 : i32
    %c0_i32_0 = arith.constant 0 : i32
    %c0_i32_1 = arith.constant 0 : i32
    %c0_i32_2 = arith.constant 0 : i32
    return %c0_i32, %c0_i32_0, %c0_i32_1 : i32, i32, i32
  }
  func.func @transform_5(%arg0: i32) -> (i32, i32) {
    %c0_i32 = arith.constant 0 : i32
    %c0_i32_0 = arith.constant 0 : i32
    %c0_i32_1 = arith.constant 0 : i32
    return %c0_i32, %c0_i32_0 : i32, i32
  }
  func.func @transform_6(%arg0: i32) -> (i32, i32) {
    %c0_i32 = arith.constant 0 : i32
    %c0_i32_0 = arith.constant 0 : i32
    %c0_i32_1 = arith.constant 0 : i32
    return %c0_i32, %c0_i32_0 : i32, i32
  }
  func.func @transform_7(%arg0: i32) -> (i32, i32) {
    %c0_i32 = arith.constant 0 : i32
    %c0_i32_0 = arith.constant 0 : i32
    return %arg0, %c0_i32 : i32, i32
  }
}

</mosaic_0001>

<bundles_post_ra>
// kernel: pinn_wave_forward.1
= control target key start
LH: loop header
LB: loop body
LE: loop exit
PB: predicated region body
PF: predicated region fallthrough
CT: control target
= control target key end

     0   :  { %vm68_vm0 = vcmask 1043456   ;;  %vm43_vm1 = vcmask 97280   ;;  %vm1027_vm2 = vmmov 1   ;;  %vm587_vm4 = vcmask 31744   ;;  %s1294_s1 = inlined_call_operand.vmem [shape: f32[12,128], index: 1, kind: input, shape index: {}]   ;;  %s1295_s0 = inlined_call_operand.vmem [shape: f32[64,12], index: 0, kind: input, shape index: {}]   ;;  %s1296_s3 = inlined_call_operand.vmem [shape: f32[2,128,128], index: 3, kind: input, shape index: {}]   ;;  %s1297_s2 = inlined_call_operand.vmem [shape: f32[1,128], index: 2, kind: input, shape index: {}]   ;;  %s1298_s5 = inlined_call_operand.vmem [shape: f32[128,4], index: 5, kind: input, shape index: {}]   ;;  %s1299_s4 = inlined_call_operand.vmem [shape: f32[2,1,128], index: 4, kind: input, shape index: {}]   ;;  %s1300_s6 = inlined_call_operand.vmem [shape: f32[1,4], index: 6, kind: input, shape index: {}]   ;;  %s1301_s7 = inlined_call_operand.vmem [shape: f32[64,4], index: 7, kind: output, shape index: {}]  }
   0x1   :  { %v34_v0 = vld [vmem:[%s1294_s1] sm:$0xff]  ;;  %v35_v1 = vld [vmem:[%s1294_s1 + $0x8] sm:$0xf]  ;;  %vm861_vm3 = vmpackc.low %vm68_vm0, %vm1027_vm2 }
   0x2   :  { %v860_v2 = vpack.c.bf16 %v35_v1, %v34_v0  ;;  %v26_v3 = vld [vmem:[%s1295_s0] sm:$0xff]  ;;  %v27_v4 = vld [vmem:[%s1295_s0 + $0x8] sm:$0xff]  ;;  %v187_v7 = vld [vmem:[%s1296_s3 + $0x10] sm:$0xff] }
   0x3   :  { %716 = vmatprep.mubr.msk.f32.mxu0 %vm43_vm1, %v26_v3  ;;  %v185_v5 = vld [vmem:[%s1296_s3] sm:$0xff]  ;;  %v186_v6 = vld [vmem:[%s1296_s3 + $0x8] sm:$0xff]  ;;  %v188_v8 = vld [vmem:[%s1296_s3 + $0x18] sm:$0xff] }
   0x4   :  { %862 = vmatprep.subr.msk.bf16.mxu0 %vm861_vm3, %v860_v2  ;;  %v28_v9 = vld [vmem:[%s1295_s0 + $0x10] sm:$0xff]  ;;  %v866_v10 = vpack.c.bf16 %v186_v6, %v185_v5  ;;  %v870_v11 = vpack.c.bf16 %v188_v8, %v187_v7  ;;  %v189_v12 = vld [vmem:[%s1296_s3 + $0x20] sm:$0xff]  ;;  %v190_v13 = vld [vmem:[%s1296_s3 + $0x28] sm:$0xff] }
   0x5   :  { %865 = vmatpush3.bf16.msk.msra.mxu0 %vm861_vm3, %v860_v2  ;;  %v29_v14 = vld [vmem:[%s1295_s0 + $0x18] sm:$0xff]  ;;  %v30_v15 = vld [vmem:[%s1295_s0 + $0x20] sm:$0xff]  ;;  %v874_v16 = vpack.c.bf16 %v190_v13, %v189_v12  ;;  %v191_v17 = vld [vmem:[%s1296_s3 + $0x30] sm:$0xff] }
   0x6   :  { %867 = vmatprep.subr.bf16.mxu1 %v866_v10  ;;  %v192_v18 = vld [vmem:[%s1296_s3 + $0x38] sm:$0xff]  ;;  %v31_v19 = vld [vmem:[%s1295_s0 + $0x28] sm:$0xff]  ;;  %v32_v20 = vld [vmem:[%s1295_s0 + $0x30] sm:$0xff] }
   0x7   :  { %869 = vmatpush3.bf16.msra.mxu1 %v866_v10  ;;  %v878_v21 = vpack.c.bf16 %v192_v18, %v191_v17  ;;  %v33_v22 = vld [vmem:[%s1295_s0 + $0x38] sm:$0xff]  ;;  %v193_v23 = vld [vmem:[%s1296_s3 + $0x40] sm:$0xff]  ;;  %v194_v24 = vld [vmem:[%s1296_s3 + $0x48] sm:$0xff] }
   0x8   :  { %717 = vmatmul.mubr.msk.f32.vlgmr.msra.gmra.mrb[0].mxu0 %vm43_vm1, %v27_v4  ;;  %871 = vmatprep.subr.bf16.mxu1 %v870_v11  ;;  %v882_v25 = vpack.c.bf16 %v194_v24, %v193_v23  ;;  %v195_v26 = vld [vmem:[%s1296_s3 + $0x50] sm:$0xff]  ;;  %v196_v27 = vld [vmem:[%s1296_s3 + $0x58] sm:$0xff]  ;;  %v197_v29 = vld [vmem:[%s1296_s3 + $0x60] sm:$0xff] }
   0x9   :  { %719 = vmatprep.mubr.msk.f32.mxu0 %vm43_vm1, %v28_v9  ;;  %v886_v28 = vpack.c.bf16 %v196_v27, %v195_v26  ;;  %v198_v30 = vld [vmem:[%s1296_s3 + $0x68] sm:$0xff]  ;;  %v199_v32 = vld [vmem:[%s1296_s3 + $0x70] sm:$0xff]  ;;  %v200_v33 = vld [vmem:[%s1296_s3 + $0x78] sm:$0xff] }
   0xa   :  { %v890_v31 = vpack.c.bf16 %v198_v30, %v197_v29  ;;  %v894_v34 = vpack.c.bf16 %v200_v33, %v199_v32  ;;  %v611_v35 = vld [vmem:[%s1296_s3 + $0x80] sm:$0xff]  ;;  %v612_v36 = vld [vmem:[%s1296_s3 + $0x88] sm:$0xff]  ;;  %v613_v37 = vld [vmem:[%s1296_s3 + $0x90] sm:$0xff] }
   0xb   :  { %873 = vmatpush3.bf16.msra.mxu1 %v870_v11  ;;  %v898_v38 = vpack.c.bf16 %v612_v36, %v611_v35  ;;  %v614_v39 = vld [vmem:[%s1296_s3 + $0x98] sm:$0xff]  ;;  %v615_v41 = vld [vmem:[%s1296_s3 + $0xa0] sm:$0xff]  ;;  %v616_v42 = vld [vmem:[%s1296_s3 + $0xa8] sm:$0xff] }
   0xc   :  { %720 = vmatmul.mubr.msk.f32.gmra.mrb[2].mxu0 %vm43_vm1, %v29_v14  ;;  %875 = vmatprep.subr.bf16.mxu1 %v874_v16  ;;  %v902_v40 = vpack.c.bf16 %v614_v39, %v613_v37  ;;  %v906_v43 = vpack.c.bf16 %v616_v42, %v615_v41  ;;  %v617_v44 = vld [vmem:[%s1296_s3 + $0xb0] sm:$0xff]  ;;  %v618_v45 = vld [vmem:[%s1296_s3 + $0xb8] sm:$0xff]  ;;  %v600_v47 = vld [vmem:[%s1297_s2] ss:$0 sm:$0xff] }
   0xd   :  { %722 = vmatprep.mubr.msk.f32.mxu0 %vm43_vm1, %v30_v15  ;;  %899 = vmatprep.subr.bf16.mxu0 %v898_v38  ;;  %v910_v46 = vpack.c.bf16 %v618_v45, %v617_v44  ;;  %v619_v8 = vld [vmem:[%s1296_s3 + $0xc0] sm:$0xff]  ;;  %v620_v9 = vld [vmem:[%s1296_s3 + $0xc8] sm:$0xff]  ;;  %v621_v11 = vld [vmem:[%s1296_s3 + $0xd0] sm:$0xff] }
   0xe   :  { %901 = vmatpush3.bf16.msra.mxu0 %v898_v38  ;;  %v914_v10 = vpack.c.bf16 %v620_v9, %v619_v8  ;;  %v622_v12 = vld [vmem:[%s1296_s3 + $0xd8] sm:$0xff]  ;;  %v623_v14 = vld [vmem:[%s1296_s3 + $0xe0] sm:$0xff]  ;;  %v624_v15 = vld [vmem:[%s1296_s3 + $0xe8] sm:$0xff] }
   0xf   :  { %877 = vmatpush3.bf16.msra.mxu1 %v874_v16  ;;  %903 = vmatprep.subr.bf16.mxu0 %v902_v40  ;;  %v918_v13 = vpack.c.bf16 %v622_v12, %v621_v11  ;;  %v922_v16 = vpack.c.bf16 %v624_v15, %v623_v14  ;;  %v625_v17 = vld [vmem:[%s1296_s3 + $0xf0] sm:$0xff]  ;;  %v626_v18 = vld [vmem:[%s1296_s3 + $0xf8] sm:$0xff]  ;;  %v463_v26 = vld [vmem:[%s1298_s5 + $0x20] sm:$0xff] }
  0x10   :  { %723 = vmatmul.mubr.msk.f32.gmra.mrb[4].mxu0 %vm43_vm1, %v31_v19  ;;  %879 = vmatprep.subr.bf16.mxu1 %v878_v21  ;;  %v926_v19 = vpack.c.bf16 %v626_v18, %v625_v17  ;;  %v462_v24 = vld [vmem:[%s1298_s5 + $0x18] sm:$0xff]  ;;  %v464_v27 = vld [vmem:[%s1298_s5 + $0x28] sm:$0xff]  ;;  %v465_v29 = vld [vmem:[%s1298_s5 + $0x30] sm:$0xff] }
  0x11   :  { %725 = vmatprep.mubr.msk.f32.mxu0 %vm43_vm1, %v32_v20  ;;  %v459_v20 = vld [vmem:[%s1298_s5] sm:$0xff]  ;;  %v466_v30 = vld [vmem:[%s1298_s5 + $0x38] sm:$0xff] }
  0x12   :  { %905 = vmatpush3.bf16.msra.mxu0 %v902_v40  ;;  %v610_v32 = vld [vmem:[%s1299_s4] ss:$0 sm:$0xff] }
  0x13   :  { %881 = vmatpush3.bf16.msra.mxu1 %v878_v21  ;;  %907 = vmatprep.subr.bf16.mxu0 %v906_v43  ;;  %v460_v21 = vld [vmem:[%s1298_s5 + $0x8] sm:$0xff] }
  0x14   :  { %726 = vmatmul.mubr.msk.f32.gmra.mrb[6].mxu0 %vm43_vm1, %v33_v22  ;;  %883 = vmatprep.subr.bf16.mxu1 %v882_v25  ;;  %v461_v22 = vld [vmem:[%s1298_s5 + $0x10] sm:$0xff]  ;;  %v930_v23 = vpack.c.bf16 %v460_v21, %v459_v20 }
  0x16   :  { %909 = vmatpush3.bf16.msra.mxu0 %v906_v43 }
  0x17   :  { %885 = vmatpush3.bf16.msra.mxu1 %v882_v25  ;;  %911 = vmatprep.subr.bf16.mxu0 %v910_v46  ;;  %v934_v25 = vpack.c.bf16 %v462_v24, %v461_v22 }
  0x18   :  { %887 = vmatprep.subr.bf16.mxu1 %v886_v28 }
  0x1a   :  { %913 = vmatpush3.bf16.msra.mxu0 %v910_v46 }
  0x1b   :  { %889 = vmatpush3.bf16.msra.mxu1 %v886_v28  ;;  %915 = vmatprep.subr.bf16.mxu0 %v914_v10  ;;  %v938_v28 = vpack.c.bf16 %v464_v27, %v463_v26 }
  0x1c   :  { %891 = vmatprep.subr.bf16.mxu1 %v890_v31 }
  0x1e   :  { %917 = vmatpush3.bf16.msra.mxu0 %v914_v10 }
  0x1f   :  { %893 = vmatpush3.bf16.msra.mxu1 %v890_v31  ;;  %919 = vmatprep.subr.bf16.mxu0 %v918_v13  ;;  %v942_v31 = vpack.c.bf16 %v466_v30, %v465_v29  ;;  %v629_v30 = vld [vmem:[%s1300_s6] ss:$0 sm:$0xff] }
  0x20   :  { %895 = vmatprep.subr.bf16.mxu1 %v894_v34 }
  0x22   :  { %921 = vmatpush3.bf16.msra.mxu0 %v918_v13 }
  0x23   :  { %897 = vmatpush3.bf16.msra.mxu1 %v894_v34  ;;  %923 = vmatprep.subr.bf16.mxu0 %v922_v16 }
  0x24   :  { %962 = vmatprep.subr.bf16.mxu1 %v930_v23 }
  0x26   :  { %925 = vmatpush3.bf16.msra.mxu0 %v922_v16 }
  0x27   :  { %927 = vmatprep.subr.bf16.mxu0 %v926_v19 }
  0x2a   :  { %929 = vmatpush3.bf16.msra.mxu0 %v926_v19 }
  0x2b   :  { %931 = vmatprep.subr.bf16.mxu0 %v930_v23 }
  0xdb   :  { %v718_v48 = vpop.f32.mrb[0].mxu0 }
  0xdc   :  { %v144_v49 = vadd.f32 %v718_v48, %v600_v47  ;;  %v138_v50 = vpop.f32.mrb[1].mxu0 }
  0xdd   :  { %v139_v51 = vadd.f32 %v600_v47, %v138_v50 }
  0xdf   :  { %979 = vtanh.f32 %v139_v51  ;;  %v721_v52 = vpop.f32.mrb[2].mxu0 }
  0xe0   :  { %981 = vtanh.f32 %v144_v49  ;;  %v154_v53 = vadd.f32 %v721_v52, %v600_v47  ;;  %v148_v54 = vpop.f32.mrb[3].mxu0 }
  0xe1   :  { %v149_v55 = vadd.f32 %v600_v47, %v148_v54 }
  0xe3   :  { %983 = vtanh.f32 %v149_v55  ;;  %v724_v56 = vpop.f32.mrb[4].mxu0 }
  0xe4   :  { %985 = vtanh.f32 %v154_v53  ;;  %v164_v57 = vadd.f32 %v724_v56, %v600_v47  ;;  %v158_v58 = vpop.f32.mrb[5].mxu0 }
  0xe5   :  { %v159_v59 = vadd.f32 %v600_v47, %v158_v58  ;;  %v468_v58 = vld [vmem:[%s1298_s5 + $0x48] sm:$0xff] }
  0xe7   :  { %987 = vtanh.f32 %v159_v59  ;;  %v727_v60 = vpop.f32.mrb[6].mxu0 }
  0xe8   :  { %989 = vtanh.f32 %v164_v57  ;;  %v174_v61 = vadd.f32 %v727_v60, %v600_v47  ;;  %v168_v62 = vpop.f32.mrb[7].mxu0  ;;  %v467_v57 = vld [vmem:[%s1298_s5 + $0x40] sm:$0xff]  ;;  %v469_v60 = vld [vmem:[%s1298_s5 + $0x50] sm:$0xff] }
  0xe9   :  { %v980_v63 = vpop.eup %979  ;;  %v169_v0 = vadd.f32 %v600_v47, %v168_v62  ;;  %v946_v59 = vpack.c.bf16 %v468_v58, %v467_v57 }
  0xea   :  { %v982_v1 = vpop.eup %981  ;;  %760 = vmatprep.mubr.f32.mxu1 %v980_v63  ;;  %v471_v63 = vld [vmem:[%s1298_s5 + $0x60] sm:$0xff] }
  0xeb   :  { %991 = vtanh.f32 %v169_v0  ;;  %761 = vmatmul.mubr.f32.vlgmr.msra.gmra.mrb[0].mxu1 %v982_v1  ;;  %v472_v0 = vld [vmem:[%s1298_s5 + $0x68] sm:$0xff] }
  0xec   :  { %993 = vtanh.f32 %v174_v61  ;;  %970 = vmatpush3.bf16.msra.mxu1 %v930_v23  ;;  %v470_v61 = vld [vmem:[%s1298_s5 + $0x58] sm:$0xff]  ;;  %v954_v1 = vpack.c.bf16 %v472_v0, %v471_v63 }
  0xed   :  { %v984_v2 = vpop.eup %983  ;;  %963 = vmatprep.subr.bf16.mxu1 %v934_v25  ;;  %v950_v62 = vpack.c.bf16 %v470_v61, %v469_v60 }
  0xee   :  { %v986_v3 = vpop.eup %985  ;;  %763 = vmatprep.mubr.f32.mxu1 %v984_v2  ;;  %v473_v2 = vld [vmem:[%s1298_s5 + $0x70] sm:$0xff] }
  0xef   :  { %764 = vmatmul.mubr.f32.gmra.mrb[2].mxu1 %v986_v3  ;;  %v474_v3 = vld [vmem:[%s1298_s5 + $0x78] sm:$0xff] }
  0xf0   :  { %971 = vmatpush3.bf16.msra.mxu1 %v934_v25 }
  0xf1   :  { %v988_v4 = vpop.eup %987  ;;  %964 = vmatprep.subr.bf16.mxu1 %v938_v28 }
  0xf2   :  { %v990_v5 = vpop.eup %989  ;;  %766 = vmatprep.mubr.f32.mxu1 %v988_v4  ;;  %v958_v4 = vpack.c.bf16 %v474_v3, %v473_v2 }
  0xf3   :  { %767 = vmatmul.mubr.f32.gmra.mrb[4].mxu1 %v990_v5  ;;  %v628_v5 = vld [vmem:[%s1299_s4 + $0x1] ss:$0 sm:$0xff] }
  0xf4   :  { %972 = vmatpush3.bf16.msra.mxu1 %v938_v28 }
  0xf5   :  { %v992_v6 = vpop.eup %991  ;;  %965 = vmatprep.subr.bf16.mxu1 %v942_v31 }
  0xf6   :  { %v994_v7 = vpop.eup %993  ;;  %769 = vmatprep.mubr.f32.mxu1 %v992_v6 }
  0xf7   :  { %770 = vmatmul.mubr.f32.gmra.mrb[6].mxu1 %v994_v7 }
  0xf8   :  { %973 = vmatpush3.bf16.msra.mxu1 %v942_v31 }
  0xf9   :  { %966 = vmatprep.subr.bf16.mxu1 %v946_v59 }
  0xfc   :  { %974 = vmatpush3.bf16.msra.mxu1 %v946_v59 }
  0xfd   :  { %967 = vmatprep.subr.bf16.mxu1 %v950_v62 }
 0x100   :  { %975 = vmatpush3.bf16.msra.mxu1 %v950_v62 }
 0x101   :  { %968 = vmatprep.subr.bf16.mxu1 %v954_v1 }
 0x104   :  { %976 = vmatpush3.bf16.msra.mxu1 %v954_v1 }
 0x105   :  { %969 = vmatprep.subr.bf16.mxu1 %v958_v4 }
 0x108   :  { %977 = vmatpush3.bf16.msra.mxu1 %v958_v4 }
 0x1be   :  { %v762_v33 = vpop.f32.mrb[0].mxu1 }
 0x1bf   :  { %v280_v34 = vadd.f32 %v762_v33, %v610_v32  ;;  %v274_v35 = vpop.f32.mrb[1].mxu1 }
 0x1c0   :  { %v275_v36 = vadd.f32 %v610_v32, %v274_v35 }
 0x1c2   :  { %995 = vtanh.f32 %v275_v36  ;;  %v765_v37 = vpop.f32.mrb[2].mxu1 }
 0x1c3   :  { %997 = vtanh.f32 %v280_v34  ;;  %v290_v38 = vadd.f32 %v765_v37, %v610_v32  ;;  %v284_v39 = vpop.f32.mrb[3].mxu1 }
 0x1c4   :  { %v285_v40 = vadd.f32 %v610_v32, %v284_v39 }
 0x1c6   :  { %999 = vtanh.f32 %v285_v40  ;;  %v768_v41 = vpop.f32.mrb[4].mxu1 }
 0x1c7   :  { %1001 = vtanh.f32 %v290_v38  ;;  %v300_v42 = vadd.f32 %v768_v41, %v610_v32  ;;  %v294_v43 = vpop.f32.mrb[5].mxu1 }
 0x1c8   :  { %v295_v44 = vadd.f32 %v610_v32, %v294_v43 }
 0x1ca   :  { %1003 = vtanh.f32 %v295_v44  ;;  %v771_v45 = vpop.f32.mrb[6].mxu1 }
 0x1cb   :  { %1005 = vtanh.f32 %v300_v42  ;;  %v310_v46 = vadd.f32 %v771_v45, %v610_v32  ;;  %v304_v47 = vpop.f32.mrb[7].mxu1 }
 0x1cc   :  { %v996_v48 = vpop.eup %995  ;;  %v305_v49 = vadd.f32 %v610_v32, %v304_v47 }
 0x1cd   :  { %v998_v50 = vpop.eup %997  ;;  %804 = vmatprep.mubr.f32.mxu0 %v996_v48 }
 0x1ce   :  { %1007 = vtanh.f32 %v305_v49  ;;  %805 = vmatmul.mubr.f32.vlgmr.msra.gmra.mrb[8].mxu0 %v998_v50 }
 0x1cf   :  { %1009 = vtanh.f32 %v310_v46  ;;  %933 = vmatpush3.bf16.msra.mxu0 %v930_v23 }
 0x1d0   :  { %v1000_v51 = vpop.eup %999  ;;  %935 = vmatprep.subr.bf16.mxu0 %v934_v25 }
 0x1d1   :  { %v1002_v52 = vpop.eup %1001  ;;  %807 = vmatprep.mubr.f32.mxu0 %v1000_v51 }
 0x1d2   :  { %808 = vmatmul.mubr.f32.gmra.mrb[10].mxu0 %v1002_v52 }
 0x1d3   :  { %937 = vmatpush3.bf16.msra.mxu0 %v934_v25 }
 0x1d4   :  { %v1004_v53 = vpop.eup %1003  ;;  %939 = vmatprep.subr.bf16.mxu0 %v938_v28 }
 0x1d5   :  { %v1006_v54 = vpop.eup %1005  ;;  %810 = vmatprep.mubr.f32.mxu0 %v1004_v53 }
 0x1d6   :  { %811 = vmatmul.mubr.f32.gmra.mrb[12].mxu0 %v1006_v54 }
 0x1d7   :  { %941 = vmatpush3.bf16.msra.mxu0 %v938_v28 }
 0x1d8   :  { %v1008_v55 = vpop.eup %1007  ;;  %943 = vmatprep.subr.bf16.mxu0 %v942_v31 }
 0x1d9   :  { %v1010_v56 = vpop.eup %1009  ;;  %813 = vmatprep.mubr.f32.mxu0 %v1008_v55 }
 0x1da   :  { %814 = vmatmul.mubr.f32.gmra.mrb[14].mxu0 %v1010_v56 }
 0x1db   :  { %945 = vmatpush3.bf16.msra.mxu0 %v942_v31 }
 0x1dc   :  { %947 = vmatprep.subr.bf16.mxu0 %v946_v59 }
 0x1df   :  { %949 = vmatpush3.bf16.msra.mxu0 %v946_v59 }
 0x1e0   :  { %951 = vmatprep.subr.bf16.mxu0 %v950_v62 }
 0x1e3   :  { %953 = vmatpush3.bf16.msra.mxu0 %v950_v62 }
 0x1e4   :  { %955 = vmatprep.subr.bf16.mxu0 %v954_v1 }
 0x1e7   :  { %957 = vmatpush3.bf16.msra.mxu0 %v954_v1 }
 0x1e8   :  { %959 = vmatprep.subr.bf16.mxu0 %v958_v4 }
 0x1eb   :  { %961 = vmatpush3.bf16.msra.mxu0 %v958_v4 }
 0x2a1   :  { %v806_v6 = vpop.f32.mrb[8].mxu0 }
 0x2a2   :  { %v418_v7 = vadd.f32 %v806_v6, %v628_v5  ;;  %v412_v8 = vpop.f32.mrb[9].mxu0 }
 0x2a3   :  { %v413_v9 = vadd.f32 %v628_v5, %v412_v8 }
 0x2a5   :  { %1011 = vtanh.f32 %v413_v9  ;;  %v809_v10 = vpop.f32.mrb[10].mxu0 }
 0x2a6   :  { %1013 = vtanh.f32 %v418_v7  ;;  %v428_v11 = vadd.f32 %v809_v10, %v628_v5  ;;  %v422_v12 = vpop.f32.mrb[11].mxu0 }
 0x2a7   :  { %v423_v13 = vadd.f32 %v628_v5, %v422_v12 }
 0x2a9   :  { %1015 = vtanh.f32 %v423_v13  ;;  %v812_v14 = vpop.f32.mrb[12].mxu0 }
 0x2aa   :  { %1017 = vtanh.f32 %v428_v11  ;;  %v438_v15 = vadd.f32 %v812_v14, %v628_v5  ;;  %v432_v16 = vpop.f32.mrb[13].mxu0 }
 0x2ab   :  { %v433_v17 = vadd.f32 %v628_v5, %v432_v16 }
 0x2ad   :  { %1019 = vtanh.f32 %v433_v17  ;;  %v815_v18 = vpop.f32.mrb[14].mxu0 }
 0x2ae   :  { %1021 = vtanh.f32 %v438_v15  ;;  %v448_v19 = vadd.f32 %v815_v18, %v628_v5  ;;  %v442_v20 = vpop.f32.mrb[15].mxu0 }
 0x2af   :  { %v1012_v21 = vpop.eup %1011  ;;  %v443_v22 = vadd.f32 %v628_v5, %v442_v20 }
 0x2b0   :  { %v1014_v23 = vpop.eup %1013  ;;  %848 = vmatprep.mubr.f32.mxu0 %v1012_v21 }
 0x2b1   :  { %1023 = vtanh.f32 %v443_v22  ;;  %849 = vmatmul.mubr.f32.vlgmr.msra.gmra.mrb[16].mxu0 %v1014_v23 }
 0x2b2   :  { %1025 = vtanh.f32 %v448_v19 }
 0x2b3   :  { %v1016_v24 = vpop.eup %1015 }
 0x2b4   :  { %v1018_v25 = vpop.eup %1017  ;;  %851 = vmatprep.mubr.f32.mxu1 %v1016_v24 }
 0x2b5   :  { %852 = vmatmul.mubr.f32.vlgmr.msra.gmra.mrb[8].mxu1 %v1018_v25 }
 0x2b7   :  { %v1020_v26 = vpop.eup %1019 }
 0x2b8   :  { %v1022_v27 = vpop.eup %1021  ;;  %854 = vmatprep.mubr.f32.mxu1 %v1020_v26 }
 0x2b9   :  { %855 = vmatmul.mubr.f32.gmra.mrb[10].mxu1 %v1022_v27 }
 0x2bb   :  { %v1024_v28 = vpop.eup %1023 }
 0x2bc   :  { %v1026_v29 = vpop.eup %1025  ;;  %857 = vmatprep.mubr.f32.mxu1 %v1024_v28 }
 0x2bd   :  { %858 = vmatmul.mubr.f32.gmra.mrb[12].mxu1 %v1026_v29 }
 0x384   :  { %v850_v31 = vpop.f32.mrb[16].mxu0 }
 0x385   :  { %v554_v32 = vadd.f32 %v850_v31, %v629_v30  ;;  %v548_v33 = vpop.f32.mrb[17].mxu0 }
 0x386   :  { %v549_v34 = vadd.f32 %v629_v30, %v548_v33 }
 0x387   :  { %589 = vst.msk [vmem:[%s1301_s7 + $0x8] sm:$0xff] %vm587_vm4, %v554_v32 }
 0x388   :  { %588 = vst.msk [vmem:[%s1301_s7] sm:$0xff] %vm587_vm4, %v549_v34  ;;  %v853_v35 = vpop.f32.mrb[8].mxu1 }
 0x389   :  { %v564_v36 = vadd.f32 %v853_v35, %v629_v30  ;;  %v558_v37 = vpop.f32.mrb[9].mxu1 }
 0x38a   :  { %v559_v38 = vadd.f32 %v629_v30, %v558_v37 }
 0x38b   :  { %591 = vst.msk [vmem:[%s1301_s7 + $0x18] sm:$0xff] %vm587_vm4, %v564_v36 }
 0x38c   :  { %590 = vst.msk [vmem:[%s1301_s7 + $0x10] sm:$0xff] %vm587_vm4, %v559_v38  ;;  %v856_v39 = vpop.f32.mrb[10].mxu1 }
 0x38d   :  { %v574_v40 = vadd.f32 %v856_v39, %v629_v30  ;;  %v568_v41 = vpop.f32.mrb[11].mxu1 }
 0x38e   :  { %v569_v42 = vadd.f32 %v629_v30, %v568_v41 }
 0x38f   :  { %593 = vst.msk [vmem:[%s1301_s7 + $0x28] sm:$0xff] %vm587_vm4, %v574_v40 }
 0x390   :  { %592 = vst.msk [vmem:[%s1301_s7 + $0x20] sm:$0xff] %vm587_vm4, %v569_v42  ;;  %v859_v43 = vpop.f32.mrb[12].mxu1 }
 0x391   :  { %v584_v44 = vadd.f32 %v859_v43, %v629_v30  ;;  %v578_v45 = vpop.f32.mrb[13].mxu1 }
 0x392   :  { %v579_v46 = vadd.f32 %v629_v30, %v578_v45 }
 0x393   :  { %595 = vst.msk [vmem:[%s1301_s7 + $0x38] sm:$0xff] %vm587_vm4, %v584_v44 }
 0x394   :  { %594 = vst.msk [vmem:[%s1301_s7 + $0x30] sm:$0xff] %vm587_vm4, %v579_v46 }

</bundles_post_ra>
